<compile_context>
chip_gen: v7x
topology: tpu7x:2x2x1
jax: 0.10.0
libtpu: 0.0.40
codegen_flags: <defaults>
</compile_context>

<pallas_src>
import jax
import jax.numpy as jnp
from jax.experimental import pallas as pl
from jax.experimental.pallas import tpu as pltpu

STATE_SIZE = 8
ACTION_SIZE = 4
HIDDEN = 64
LANE = 128          # lane-dense padded width for the fc3 matmul / softmax
NEG_BIG = -1e30     # "minus infinity" for padded logits (finite -> no inf/nan)
MAX_TB = 2048       # rows per grid step; block VMEM stays < ~300 KB


def _round_up(x, m):
    return ((x + m - 1) // m) * m


def _cdiv(a, b):
    return (a + b - 1) // b


def _choose_tiling(batch):
    """Pick (TB, n_steps).

    Single block whenever it fits comfortably (removes per-step pipeline
    overhead); otherwise an even number of steps so the batch axis shards
    evenly across v7x's two TensorCores, with TB chosen to minimize padding.
    """
    b8 = _round_up(max(batch, 1), 8)
    if b8 <= MAX_TB:
        return b8, 1
    n_steps = _round_up(_cdiv(b8, MAX_TB), 2)          # even step count (v7x)
    tb = _round_up(_cdiv(b8, n_steps), 8)
    return tb, n_steps


def actor_kernel(x_ref, w1_ref, b1_ref, w2_ref, b2_ref, w3_ref, b3_ref, out_ref):
    x = x_ref[...]                                                    # (TB, 8) f32

    # fc1 + relu
    h1 = jnp.dot(x, w1_ref[...], preferred_element_type=jnp.float32) + b1_ref[...]
    h1 = jnp.maximum(h1, 0.0)

    # fc2 + relu
    h2 = jnp.dot(h1, w2_ref[...], preferred_element_type=jnp.float32) + b2_ref[...]
    h2 = jnp.maximum(h2, 0.0)

    # fc3 (lane-padded to 128 cols; padded cols carry a ~-1e30 bias) + softmax
    logits = jnp.dot(h2, w3_ref[...], preferred_element_type=jnp.float32) + b3_ref[...]
    m = jnp.max(logits, axis=-1, keepdims=True)                       # real cols dominate
    e = jnp.exp(logits - m)                                           # padded cols -> 0
    denom = jnp.sum(e, axis=-1, keepdims=True)                        # >= 1, never 0
    inv = 1.0 / denom                                                 # exact f32 divide
    # Store only the 4 real action columns (narrow HBM writeback).
    out_ref[...] = e[:, :ACTION_SIZE] * inv


def prepare_params(params):
    """One-time preprocessing: pad fc3 to 128 output columns.

    Zero weight columns + ~-inf bias on the pad means the padded logits
    contribute exactly 0 probability, while the matmul and softmax reductions
    run on full 128-lane vregs inside the kernel.
    """
    w1, b1, w2, b2, w3, b3 = params
    pad = LANE - ACTION_SIZE
    w3p = jnp.pad(w3, ((0, 0), (0, pad)))
    b3p = jnp.pad(b3, ((0, 0), (0, pad)), constant_values=NEG_BIG)
    return (w1, b1, w2, b2, w3p, b3p)


@jax.jit
def actor_forward(state, kernel_params):
    """state: [B, STATE_SIZE] f32 -> action_probs: [B, ACTION_SIZE] f32.

    `kernel_params` must come from prepare_params(); the jit fuses the batch
    pad, the pallas_call and the row slice into one executable.
    """
    w1, b1, w2, b2, w3p, b3p = kernel_params
    B = state.shape[0]

    TB, n_steps = _choose_tiling(B)
    B_pad = TB * n_steps
    if B_pad != B:
        state = jnp.pad(state, ((0, B_pad - B), (0, 0)))   # zero rows: safe, sliced off

    out = pl.pallas_call(
        actor_kernel,
        out_shape=jax.ShapeDtypeStruct((B_pad, ACTION_SIZE), jnp.float32),
        grid=(n_steps,),
        in_specs=[
            pl.BlockSpec((TB, STATE_SIZE), lambda i: (i, 0)),      # state: tiled over batch
            pl.BlockSpec((STATE_SIZE, HIDDEN), lambda i: (0, 0)),  # w1: VMEM-resident
            pl.BlockSpec((1, HIDDEN), lambda i: (0, 0)),           # b1: resident
            pl.BlockSpec((HIDDEN, HIDDEN), lambda i: (0, 0)),      # w2: resident
            pl.BlockSpec((1, HIDDEN), lambda i: (0, 0)),           # b2: resident
            pl.BlockSpec((HIDDEN, LANE), lambda i: (0, 0)),        # w3 (padded): resident
            pl.BlockSpec((1, LANE), lambda i: (0, 0)),             # b3 (padded): resident
        ],
        out_specs=pl.BlockSpec((TB, ACTION_SIZE), lambda i: (i, 0)),  # only real columns
        compiler_params=pltpu.CompilerParams(
            dimension_semantics=("parallel",)),                    # shard batch across TCs
    )(state, w1, b1, w2, b2, w3p, b3p)

    return out[:B]


def init_params(key):
    """Deterministic parameter init mimicking nn.Linear's U(-1/sqrt(fan_in), +)."""
    def linear(key, fan_in, fan_out):
        kw, kb = jax.random.split(key)
        bound = 1.0 / jnp.sqrt(fan_in)
        # stored as (in, out) so the kernel can do x @ W
        w = jax.random.uniform(kw, (fan_in, fan_out), jnp.float32, -bound, bound)
        b = jax.random.uniform(kb, (1, fan_out), jnp.float32, -bound, bound)
        return w, b

    k1, k2, k3 = jax.random.split(key, 3)
    w1, b1 = linear(k1, STATE_SIZE, HIDDEN)
    w2, b2 = linear(k2, HIDDEN, HIDDEN)
    w3, b3 = linear(k3, HIDDEN, ACTION_SIZE)
    return (w1, b1, w2, b2, w3, b3)


def actor_ref(state, params):
    """Pure-JAX reference for sanity checking."""
    w1, b1, w2, b2, w3, b3 = params
    h1 = jnp.maximum(state @ w1 + b1, 0.0)
    h2 = jnp.maximum(h1 @ w2 + b2, 0.0)
    logits = h2 @ w3 + b3
    return jax.nn.softmax(logits, axis=-1)


if __name__ == "__main__":
    key = jax.random.PRNGKey(0)
    k_params, k_state, k_state2 = jax.random.split(key, 3)

    params = init_params(k_params)
    kernel_params = prepare_params(params)          # padded once, reused per call

    # Small RL-style batch (matches the module's single-env use case).
    batch = 2
    state = jax.random.normal(k_state, (batch, STATE_SIZE), dtype=jnp.float32)
    probs = jax.block_until_ready(actor_forward(state, kernel_params))
    ref = actor_ref(state, params)
    assert probs.shape == (batch, ACTION_SIZE)
    assert bool(jnp.all(jnp.abs(jnp.sum(probs, axis=-1) - 1.0) < 1e-3))
    assert bool(jnp.allclose(probs, ref, atol=2e-3, rtol=2e-3))

    # Larger, non-multiple-of-8 batch: exercises the batch-padding path.
    batch2 = 517
    state2 = jax.random.normal(k_state2, (batch2, STATE_SIZE), dtype=jnp.float32)
    probs2 = jax.block_until_ready(actor_forward(state2, kernel_params))
    ref2 = actor_ref(state2, params)
    assert probs2.shape == (batch2, ACTION_SIZE)
    assert bool(jnp.all(jnp.abs(jnp.sum(probs2, axis=-1) - 1.0) < 1e-3))
    assert bool(jnp.allclose(probs2, ref2, atol=2e-3, rtol=2e-3))

    print("KERNEL_OK")
</pallas_src>

<mosaic_0001>
module attributes {stable_mosaic.version = 11 : i64} {
  func.func @actor_kernel(%arg0: i32, %arg1: memref<8x8xf32, #tpu.memory_space<vmem>>, %arg2: memref<8x64xf32, #tpu.memory_space<vmem>>, %arg3: memref<1x64xf32, #tpu.memory_space<vmem>>, %arg4: memref<64x64xf32, #tpu.memory_space<vmem>>, %arg5: memref<1x64xf32, #tpu.memory_space<vmem>>, %arg6: memref<64x128xf32, #tpu.memory_space<vmem>>, %arg7: memref<1x128xf32, #tpu.memory_space<vmem>>, %arg8: memref<8x4xf32, #tpu.memory_space<vmem>>) attributes {dimension_semantics = [#tpu.dimension_semantics<parallel>], iteration_bounds = array<i64: 1>, scalar_prefetch = 0 : i64, scratch_operands = 0 : i64, tpu.core_type = #tpu.core_type<tc>, window_params = [{transform_indices = @transform_0, window_bounds = array<i64: 8, 8>}, {pipeline_mode = #tpu.pipeline_mode<synchronous>, transform_indices = @transform_1, window_bounds = array<i64: 8, 64>}, {pipeline_mode = #tpu.pipeline_mode<synchronous>, transform_indices = @transform_2, window_bounds = array<i64: 1, 64>}, {pipeline_mode = #tpu.pipeline_mode<synchronous>, transform_indices = @transform_3, window_bounds = array<i64: 64, 64>}, {pipeline_mode = #tpu.pipeline_mode<synchronous>, transform_indices = @transform_4, window_bounds = array<i64: 1, 64>}, {pipeline_mode = #tpu.pipeline_mode<synchronous>, transform_indices = @transform_5, window_bounds = array<i64: 64, 128>}, {pipeline_mode = #tpu.pipeline_mode<synchronous>, transform_indices = @transform_6, window_bounds = array<i64: 1, 128>}, {transform_indices = @transform_7, window_bounds = array<i64: 8, 4>}]} {
    %c0 = arith.constant 0 : index
    %c0_0 = arith.constant 0 : index
    %0 = vector.load %arg1[%c0, %c0_0] : memref<8x8xf32, #tpu.memory_space<vmem>>, vector<8x8xf32>
    %c0_1 = arith.constant 0 : index
    %c0_2 = arith.constant 0 : index
    %1 = vector.load %arg2[%c0_1, %c0_2] : memref<8x64xf32, #tpu.memory_space<vmem>>, vector<8x64xf32>
    %cst = arith.constant dense<0.000000e+00> : vector<8x64xf32>
    %2 = tpu.matmul %0, %1, %cst {dimension_numbers = #tpu.dot_dimension_numbers<[1], [0], [0], [1], [0, 0, 1, 1], [], []>} : vector<8x8xf32>, vector<8x64xf32>, vector<8x64xf32> -> vector<8x64xf32>
    %c0_3 = arith.constant 0 : index
    %c0_4 = arith.constant 0 : index
    %3 = vector.load %arg3[%c0_3, %c0_4] : memref<1x64xf32, #tpu.memory_space<vmem>>, vector<1x64xf32>
    %4 = vector.broadcast %3 : vector<1x64xf32> to vector<8x64xf32>
    %5 = arith.addf %2, %4 : vector<8x64xf32>
    %cst_5 = arith.constant 0.000000e+00 : f32
    %6 = vector.broadcast %cst_5 : f32 to vector<8x64xf32>
    %7 = arith.maximumf %5, %6 : vector<8x64xf32>
    %c0_6 = arith.constant 0 : index
    %c0_7 = arith.constant 0 : index
    %8 = vector.load %arg4[%c0_6, %c0_7] : memref<64x64xf32, #tpu.memory_space<vmem>>, vector<64x64xf32>
    %cst_8 = arith.constant dense<0.000000e+00> : vector<8x64xf32>
    %9 = tpu.matmul %7, %8, %cst_8 {dimension_numbers = #tpu.dot_dimension_numbers<[1], [0], [0], [1], [0, 0, 1, 1], [], []>} : vector<8x64xf32>, vector<64x64xf32>, vector<8x64xf32> -> vector<8x64xf32>
    %c0_9 = arith.constant 0 : index
    %c0_10 = arith.constant 0 : index
    %10 = vector.load %arg5[%c0_9, %c0_10] : memref<1x64xf32, #tpu.memory_space<vmem>>, vector<1x64xf32>
    %11 = vector.broadcast %10 : vector<1x64xf32> to vector<8x64xf32>
    %12 = arith.addf %9, %11 : vector<8x64xf32>
    %cst_11 = arith.constant 0.000000e+00 : f32
    %13 = vector.broadcast %cst_11 : f32 to vector<8x64xf32>
    %14 = arith.maximumf %12, %13 : vector<8x64xf32>
    %c0_12 = arith.constant 0 : index
    %c0_13 = arith.constant 0 : index
    %15 = vector.load %arg6[%c0_12, %c0_13] : memref<64x128xf32, #tpu.memory_space<vmem>>, vector<64x128xf32>
    %cst_14 = arith.constant dense<0.000000e+00> : vector<8x128xf32>
    %16 = tpu.matmul %14, %15, %cst_14 {dimension_numbers = #tpu.dot_dimension_numbers<[1], [0], [0], [1], [0, 0, 1, 1], [], []>} : vector<8x64xf32>, vector<64x128xf32>, vector<8x128xf32> -> vector<8x128xf32>
    %c0_15 = arith.constant 0 : index
    %c0_16 = arith.constant 0 : index
    %17 = vector.load %arg7[%c0_15, %c0_16] : memref<1x128xf32, #tpu.memory_space<vmem>>, vector<1x128xf32>
    %18 = vector.broadcast %17 : vector<1x128xf32> to vector<8x128xf32>
    %19 = arith.addf %16, %18 : vector<8x128xf32>
    %cst_17 = arith.constant dense<0xFF800000> : vector<8xf32>
    %20 = vector.multi_reduction <maximumf>, %19, %cst_17 [1] : vector<8x128xf32> to vector<8xf32>
    %21 = vector.shape_cast %20 : vector<8xf32> to vector<8x1xf32>
    %22 = vector.broadcast %21 : vector<8x1xf32> to vector<8x128xf32>
    %23 = arith.subf %19, %22 : vector<8x128xf32>
    %24 = math.exp %23 : vector<8x128xf32>
    %cst_18 = arith.constant dense<0.000000e+00> : vector<8xf32>
    %25 = vector.multi_reduction <add>, %24, %cst_18 [1] : vector<8x128xf32> to vector<8xf32>
    %26 = vector.shape_cast %25 : vector<8xf32> to vector<8x1xf32>
    %cst_19 = arith.constant 1.000000e+00 : f32
    %27 = vector.broadcast %cst_19 : f32 to vector<8x1xf32>
    %28 = arith.divf %27, %26 : vector<8x1xf32>
    %29 = vector.extract_strided_slice %24 {offsets = [0, 0], sizes = [8, 4], strides = [1, 1]} : vector<8x128xf32> to vector<8x4xf32>
    %30 = vector.broadcast %28 : vector<8x1xf32> to vector<8x4xf32>
    %31 = arith.mulf %29, %30 : vector<8x4xf32>
    %c0_20 = arith.constant 0 : index
    %c0_21 = arith.constant 0 : index
    %32 = vector.load %arg8[%c0_20, %c0_21] : memref<8x4xf32, #tpu.memory_space<vmem>>, vector<8x4xf32>
    tpu.vector_store %arg8[%c0_20, %c0_21], %31 {strides = array<i32>} : memref<8x4xf32, #tpu.memory_space<vmem>>, vector<8x4xf32>,
    return
  }
  func.func @transform_0(%arg0: i32) -> (i32, i32) {
    %c0_i32 = arith.constant 0 : i32
    %c0_i32_0 = arith.constant 0 : i32
    return %arg0, %c0_i32 : i32, i32
  }
  func.func @transform_1(%arg0: i32) -> (i32, i32) {
    %c0_i32 = arith.constant 0 : i32
    %c0_i32_0 = arith.constant 0 : i32
    %c0_i32_1 = arith.constant 0 : i32
    return %c0_i32, %c0_i32_0 : i32, i32
  }
  func.func @transform_2(%arg0: i32) -> (i32, i32) {
    %c0_i32 = arith.constant 0 : i32
    %c0_i32_0 = arith.constant 0 : i32
    %c0_i32_1 = arith.constant 0 : i32
    return %c0_i32, %c0_i32_0 : i32, i32
  }
  func.func @transform_3(%arg0: i32) -> (i32, i32) {
    %c0_i32 = arith.constant 0 : i32
    %c0_i32_0 = arith.constant 0 : i32
    %c0_i32_1 = arith.constant 0 : i32
    return %c0_i32, %c0_i32_0 : i32, i32
  }
  func.func @transform_4(%arg0: i32) -> (i32, i32) {
    %c0_i32 = arith.constant 0 : i32
    %c0_i32_0 = arith.constant 0 : i32
    %c0_i32_1 = arith.constant 0 : i32
    return %c0_i32, %c0_i32_0 : i32, i32
  }
  func.func @transform_5(%arg0: i32) -> (i32, i32) {
    %c0_i32 = arith.constant 0 : i32
    %c0_i32_0 = arith.constant 0 : i32
    %c0_i32_1 = arith.constant 0 : i32
    return %c0_i32, %c0_i32_0 : i32, i32
  }
  func.func @transform_6(%arg0: i32) -> (i32, i32) {
    %c0_i32 = arith.constant 0 : i32
    %c0_i32_0 = arith.constant 0 : i32
    %c0_i32_1 = arith.constant 0 : i32
    return %c0_i32, %c0_i32_0 : i32, i32
  }
  func.func @transform_7(%arg0: i32) -> (i32, i32) {
    %c0_i32 = arith.constant 0 : i32
    %c0_i32_0 = arith.constant 0 : i32
    return %arg0, %c0_i32 : i32, i32
  }
}

</mosaic_0001>

<bundles_post_ra>
// kernel: actor_forward.1
= control target key start
LH: loop header
LB: loop body
LE: loop exit
PB: predicated region body
PF: predicated region fallthrough
CT: control target
= control target key end

     0   :  { %12 = vsyncpa [#allocation3], 0  ;;  %s578_s0 = inlined_call_operand.vmem [shape: f32[8,8], index: 0, kind: input, shape index: {}]   ;;  %s579_s1 = inlined_call_operand.vmem [shape: f32[8,64], index: 1, kind: input, shape index: {}]   ;;  %s580_s2 = inlined_call_operand.vmem [shape: f32[1,64], index: 2, kind: input, shape index: {}]   ;;  %s581_s3 = inlined_call_operand.hbm [shape: f32[64,64], index: 3, kind: input, shape index: {}]   ;;  %s582_s4 = inlined_call_operand.vmem [shape: f32[1,64], index: 4, kind: input, shape index: {}]   ;;  %s583_s5 = inlined_call_operand.hbm [shape: f32[64,128], index: 5, kind: input, shape index: {}]   ;;  %s584_s6 = inlined_call_operand.vmem [shape: f32[1,128], index: 6, kind: input, shape index: {}]   ;;  %s585_s7 = inlined_call_operand.vmem [shape: f32[8,4], index: 7, kind: output, shape index: {}]  }
   0x1   :  { %13 = vsyncpa [#allocation5], 0  ;;  %s486_s24 = smov [#allocation2]   ;;  %s438_s28 = scalar_lea.hbm %s581_s3, 1024 }
   0x2   :  { %s25_s25 = sshll.u32 %s486_s24, 4  ;;  %p439_p0 = scmp.ne.s32.totalorder %s581_s3, %s438_s28  ;;  %s26_s25 = int_to_ptr.vmem [resolvable:$true] %s25_s25 }
   0x3   :  { %p442_p1 = scmp.lt.u32.totalorder %s438_s28, %s581_s3 }
   0x5   :  { %p444_p2 = pnand %p442_p1, %p439_p0 }
   0x7   :  { %447 = shalt.err (!%p444_p2)
}
   0x8   :  { %s448_s10 = scalar_lea.vmem %s26_s25, 1024  ;;  %p453_p4 = scmp.lt.s32.totalorder %s26_s25, %s26_s25 }
   0x9   :  { %p449_p3 = scmp.ne.s32.totalorder %s26_s25, %s448_s10  ;;  %p454_p5 = scmp.lt.s32.totalorder %s448_s10, %s448_s10 }
   0xb   :  { %p455_p6 = por %p454_p5, %p453_p4 }
   0xd   :  { %p456_p7 = pnand %p455_p6, %p449_p3 }
   0xf   :  { %459 = shalt.err (!%p456_p7)
}
  0x10   :  { %s487_s11 = smov 128   ;;  %s488_s12 = smov 8  }
  0x11   :  { %31 = dma.hbm_to_vmem [thread:$0]  %s581_s3, 1024, %s26_s25, [#allocation3], %s487_s11, %s487_s11, %s488_s12  }
  0x12   :  { %s489_s15 = smov [#allocation4]   ;;  %s460_s19 = scalar_lea.hbm %s583_s5, 1024 }
  0x13   :  { %s39_s16 = sshll.u32 %s489_s15, 4  ;;  %p461_p8 = scmp.ne.s32.totalorder %s583_s5, %s460_s19  ;;  %s40_s16 = int_to_ptr.vmem [resolvable:$true] %s39_s16 }
  0x14   :  { %p464_p9 = scmp.lt.u32.totalorder %s460_s19, %s583_s5 }
  0x16   :  { %p466_p10 = pnand %p464_p9, %p461_p8 }
  0x18   :  { %469 = shalt.err (!%p466_p10)
}
  0x19   :  { %s470_s24 = scalar_lea.vmem %s40_s16, 1024  ;;  %p475_p12 = scmp.lt.s32.totalorder %s40_s16, %s40_s16 }
  0x1a   :  { %p471_p11 = scmp.ne.s32.totalorder %s40_s16, %s470_s24  ;;  %p476_p13 = scmp.lt.s32.totalorder %s470_s24, %s470_s24 }
  0x1c   :  { %p477_p0 = por %p476_p13, %p475_p12 }
  0x1e   :  { %p478_p1 = pnand %p477_p0, %p471_p11 }
  0x20   :  { %481 = shalt.err (!%p478_p1)
}
  0x21   :  { %45 = dma.hbm_to_vmem [thread:$0]  %s583_s5, 1024, %s40_s16, [#allocation5], %s487_s11, %s487_s11, %s488_s12  }
  0x22   :  { %482 = dma.done.wait [#allocation3], 1024  }
  0x23   :  { %483 = vsyncadd [#allocation3], 4294966272 }
  0x24   :  { %484 = dma.done.wait [#allocation5], 1024  }
  0x25   :  { %485 = vsyncadd [#allocation5], 4294966272  ;;  %v490_v0 = vmov 0.0   ;;  %vm491_vm0 = vmmov 0   ;;  %v492_v1 = vmov 0.0|0.0   ;;  %vm63_vm1 = vcmask 64512  }
  0x26   :  { %360 = vmatprep.subr.mxu0 %v490_v0  ;;  %362 = vmatprep.mubr.msk.f32.mxu0 %vm491_vm0, %v490_v0  ;;  %v55_v2 = vld [vmem:[%s579_s1] sm:$0xff]  ;;  %v139_v5 = vld [vmem:[#allocation2 + $0x8] sm:$0xff]  ;;  %v140_v6 = vld [vmem:[#allocation2 + $0x10] sm:$0xff]  ;;  %vm153_vm2 = vcmask 523264   ;;  %vm326_vm3 = vcmask 31744  }
  0x27   :  { %403 = vmatprep.subr.bf16.mxu1 %v492_v1  ;;  %381 = vmatprep.mubr.msk.f32.mxu1 %vm491_vm0, %v490_v0  ;;  %v54_v3 = vld [vmem:[%s578_s0] sm:$0xff]  ;;  %v141_v7 = vld [vmem:[#allocation2 + $0x18] sm:$0xff]  ;;  %v143_v11 = vld [vmem:[#allocation2 + $0x28] sm:$0xff] }
  0x28   :  { %v138_v4 = vld [vmem:[#allocation2] sm:$0xff]  ;;  %361 = vmatpush3.msra.mxu0 %v55_v2  ;;  %v407_v9 = vpack.c.bf16 %v141_v7, %v140_v6  ;;  %v144_v13 = vld [vmem:[#allocation2 + $0x30] sm:$0xff]  ;;  %v145_v14 = vld [vmem:[#allocation2 + $0x38] sm:$0xff] }
  0x29   :  { %363 = vmatmul.mubr.msk.f32.vlgmr.msra.gmra.mrb[0].mxu0 %vm63_vm1, %v54_v3  ;;  %v404_v8 = vpack.c.bf16 %v139_v5, %v138_v4  ;;  %415 = vmatprep.subr.bf16.mxu0 %v492_v1  ;;  %v142_v10 = vld [vmem:[#allocation2 + $0x20] sm:$0xff]  ;;  %v413_v15 = vpack.c.bf16 %v145_v14, %v144_v13  ;;  %v229_v17 = vld [vmem:[#allocation4 + $0x8] sm:$0xff]  ;;  %v230_v18 = vld [vmem:[#allocation4 + $0x10] sm:$0xff] }
  0x2a   :  { %400 = vmatprep.mubr.msk.f32.mxu0 %vm491_vm0, %v490_v0  ;;  %v410_v12 = vpack.c.bf16 %v143_v11, %v142_v10  ;;  %v228_v16 = vld [vmem:[#allocation4] sm:$0xff]  ;;  %v231_v20 = vld [vmem:[#allocation4 + $0x18] sm:$0xff]  ;;  %v233_v23 = vld [vmem:[#allocation4 + $0x28] sm:$0xff] }
  0x2b   :  { %405 = vmatpush3.bf16.msra.mxu1 %v404_v8  ;;  %v416_v19 = vpack.c.bf16 %v229_v17, %v228_v16  ;;  %v419_v21 = vpack.c.bf16 %v231_v20, %v230_v18  ;;  %v232_v22 = vld [vmem:[#allocation4 + $0x20] sm:$0xff]  ;;  %v234_v30 = vld [vmem:[#allocation4 + $0x30] sm:$0xff]  ;;  %v235_v31 = vld [vmem:[#allocation4 + $0x38] sm:$0xff] }
  0x2c   :  { %406 = vmatprep.subr.bf16.mxu1 %v492_v1  ;;  %v422_v24 = vpack.c.bf16 %v233_v23, %v232_v22  ;;  %v334_v25 = vld [vmem:[%s580_s2] ss:$0 sm:$0xff]  ;;  %v425_v32 = vpack.c.bf16 %v235_v31, %v234_v30 }
  0x2d   :  { %417 = vmatpush3.bf16.msra.mxu0 %v416_v19  ;;  %v336_v33 = vld [vmem:[%s582_s4] ss:$0 sm:$0xff] }
  0x2e   :  { %418 = vmatprep.subr.bf16.mxu0 %v492_v1  ;;  %v338_v38 = vld [vmem:[%s584_s6] ss:$0 sm:$0xff] }
  0x2f   :  { %408 = vmatpush3.bf16.msra.mxu1 %v407_v9 }
  0x30   :  { %409 = vmatprep.subr.bf16.mxu1 %v492_v1 }
  0x31   :  { %420 = vmatpush3.bf16.msra.mxu0 %v419_v21 }
  0x32   :  { %421 = vmatprep.subr.bf16.mxu0 %v492_v1 }
  0x33   :  { %411 = vmatpush3.bf16.msra.mxu1 %v410_v12 }
  0x34   :  { %412 = vmatprep.subr.bf16.mxu1 %v492_v1 }
  0x35   :  { %423 = vmatpush3.bf16.msra.mxu0 %v422_v24 }
  0x36   :  { %424 = vmatprep.subr.bf16.mxu0 %v492_v1 }
  0x37   :  { %414 = vmatpush3.bf16.msra.mxu1 %v413_v15 }
  0x39   :  { %426 = vmatpush3.bf16.msra.mxu0 %v425_v32 }
  0xfc   :  { %v133_v26 = vpop.f32.mrb[0].mxu0 }
  0xfd   :  { %v134_v27 = vadd.f32 %v334_v25, %v133_v26  ;;  %v364_v28 = vpop.f32.mrb[1].mxu0 }
  0xff   :  { %v137_v29 = vmax.f32 %v134_v27, 0.0 }
 0x101   :  { %382 = vmatmul.mubr.msk.f32.vlgmr.msra.gmra.mrb[0].mxu1 %vm153_vm2, %v137_v29 }
 0x1d4   :  { %v223_v34 = vpop.f32.mrb[0].mxu1 }
 0x1d5   :  { %v224_v35 = vadd.f32 %v336_v33, %v223_v34  ;;  %v383_v36 = vpop.f32.mrb[1].mxu1 }
 0x1d7   :  { %v227_v37 = vmax.f32 %v224_v35, 0.0 }
 0x1d9   :  { %401 = vmatmul.mubr.msk.f32.vlgmr.msra.gmra.mrb[2].mxu0 %vm153_vm2, %v227_v37 }
 0x2ac   :  { %v312_v39 = vpop.f32.mrb[2].mxu0 }
 0x2ad   :  { %v313_v40 = vadd.f32 %v338_v38, %v312_v39  ;;  %v402_v41 = vpop.f32.mrb[3].mxu0 }
 0x2af   :  { %316 = vmax.xlane.f32.xlu0 %v313_v40 }
 0x33c   :  { %v317_v42 = vpop.xlane.xlu0 %316 }
 0x33d   :  { %v318_v43 = vsub.f32 %v313_v40, %v317_v42 }
 0x33f   :  { %v319_v44 = vmul.f32 1.442695, %v318_v43 }
 0x341   :  { %434 = vpow2.f32 %v319_v44 }
 0x34b   :  { %v435_v45 = vpop.eup %434 }
 0x34c   :  { %321 = vadd.xlane.f32.xlu0 %v435_v45 }
 0x3d9   :  { %v322_v46 = vpop.xlane.xlu0 %321 }
 0x3da   :  { %436 = vrcp.f32 %v322_v46 }
 0x3e4   :  { %v437_v47 = vpop.eup %436 }
 0x3e5   :  { %v325_v48 = vmul.f32 %v437_v47, %v435_v45 }
 0x3e7   :  { %327 = vst.msk [vmem:[%s585_s7] sm:$0xff] %vm326_vm3, %v325_v48 }
 0x3e8   :  { %332 = vsyncpa [#allocation3], 1 }
 0x3e9   :  { %333 = vsyncpa [#allocation5], 1 }

</bundles_post_ra>
